<compile_context>
chip_gen: v5e
topology: v5e:2x2
jax: 0.10.0
libtpu: 0.0.40
codegen_flags: <defaults>
</compile_context>

<pallas_src>
import functools

import jax
import jax.numpy as jnp
from jax import lax
from jax.experimental import pallas as pl
from jax.experimental.pallas import tpu as pltpu


def _round_up(v, m):
    return -(-v // m) * m


def _pick_pack_factor(c, h, w, pad, *, max_lin=1024):
    """Number of raw input rows packed per 2-D row (k).

    Valid k: k even and k | h (a packed row stays inside one channel), or
    k = q*h with q | c and q | pad (a packed row holds q whole channels).
    Either way the same (k*w, (k/2)*w_out) 0/1 matrix maps packed input row r
    to packed output row r (H/W decimation + re-packing), and the channel zero
    padding becomes whole leading/trailing packed output rows.
    """
    w_out = w // 2
    cands = [2]                                   # k=2 always valid (h is even)
    for k in range(4, h + 1, 2):
        if h % k == 0 and k * w <= max_lin:
            cands.append(k)
    for q in range(2, c + 1):
        if c % q == 0 and pad % q == 0 and q * h * w <= max_lin:
            cands.append(q * h)
    lane_ok = [k for k in cands if ((k // 2) * w_out) % 128 == 0]
    if lane_ok:
        # Prefer lane-dense packings whose row count keeps sublane-aligned
        # reshapes (R_in % 8 == 0), then the smallest such k.
        return min(lane_ok, key=lambda k: (((c * h) // k) % 8 != 0, k))
    return max(cands, key=lambda k: (k // 2) * w_out)   # best-effort lane width


def _pick_batch_block(n, per_image_bytes, *, max_nb=64,
                      budget_bytes=8 << 20, min_steps=4):
    """Largest divisor of n (<= max_nb) within the single-buffered VMEM budget
    that keeps at least `min_steps` grid steps (so both v7x TensorCores stay
    busy and pipelined).  BlockSpec double-buffers in+out (~2x); the 8 MiB
    budget therefore uses ~16 MiB of the 32 MiB vmem_limit_bytes set below,
    which is safe on v5e/v6e (128 MiB physical) and v7x (64 MiB physical)."""
    best = 1
    steps_needed = min(min_steps, n)
    for cand in range(1, min(n, max_nb) + 1):
        if n % cand:
            # TODO(synk): cdiv grid + masked tail block for awkward batch sizes.
            continue
        if cand * per_image_bytes > budget_bytes:
            continue
        if n // cand < steps_needed:
            continue
        best = cand
    return best


def _padding_downsample_kernel(x_ref, sel_ref, o_ref, *, pad_rows, precision):
    # x_ref:   (nb, R_in,  Lin)   -- nb images, k raw rows lane-packed per row
    # sel_ref: (Lin, Lout)        -- 0/1 selection matrix, resident in VMEM
    # o_ref:   (nb, R_out, Lout)  -- R_out = R_in + 2*pad_rows, lane-dense
    nb, r_in, l_in = x_ref.shape
    l_out = o_ref.shape[-1]

    # One tall matmul for ALL images in the block: H-decimation, W-decimation
    # and output-row re-packing in a single MXU pass.
    x2 = x_ref[...].reshape(nb * r_in, l_in)
    y = jnp.dot(x2, sel_ref[...], precision=precision,
                preferred_element_type=jnp.float32)
    y = y.astype(o_ref.dtype).reshape(nb, r_in, l_out)

    if pad_rows > 0:
        zpad = jnp.zeros((nb, pad_rows, l_out), o_ref.dtype)
        o_ref[:, pl.ds(0, pad_rows), :] = zpad                         # lead pad
        o_ref[:, pl.ds(pad_rows + r_in, pad_rows), :] = zpad           # tail pad
    o_ref[:, pl.ds(pad_rows, r_in), :] = y                             # data


def padding_downsampling(x, planes):
    """Pallas TPU implementation of PaddingDownsampling.forward (NCHW)."""
    if not jnp.issubdtype(x.dtype, jnp.floating):
        # TODO(synk): integer dtypes need a non-MXU copy path (v7x MXU has no
        # integer mode); this kernel assumes floating-point activations.
        raise NotImplementedError("padding_downsampling: floating dtypes only")

    n, c, h, w = x.shape
    pad = planes // 4

    # Pad H/W to even (no-op for CIFAR shapes).  The extra trailing row/column
    # sits at an odd index and is never selected, so semantics are unchanged.
    if h % 2:
        x = jnp.pad(x, ((0, 0), (0, 0), (0, 1), (0, 0)))
        h += 1
    if w % 2:
        x = jnp.pad(x, ((0, 0), (0, 0), (0, 0), (0, 1)))
        w += 1
    h_out, w_out = h // 2, w // 2
    c_out = c + 2 * pad

    # Lane packing: k raw input rows per packed row.
    k = _pick_pack_factor(c, h, w, pad)
    lin = k * w
    lout = (k // 2) * w_out
    r_in = (c * h) // k
    pad_rows = (pad * h_out * w_out) // lout
    r_out = r_in + 2 * pad_rows
    assert r_in * lin == c * h * w
    assert (pad * h_out * w_out) % lout == 0
    assert r_out * lout == c_out * h_out * w_out

    # Free metadata reshape of the contiguous NCHW array.
    x3 = x.reshape(n, r_in, lin)

    # 0/1 selection matrix: sel[i, j] = 1 iff packed-input element i is the
    # (even row, even column) source of packed-output element j.
    ii = jnp.arange(lin)[:, None]
    jj = jnp.arange(lout)[None, :]
    sel = ((ii // w == 2 * (jj // w_out)) &
           (ii % w == 2 * (jj % w_out))).astype(x.dtype)

    per_image = x.dtype.itemsize * (
        _round_up(r_in, 8) * _round_up(lin, 128)
        + _round_up(r_out, 8) * _round_up(lout, 128))
    nb = _pick_batch_block(n, per_image)

    # 0/1 weights: f32 needs HIGHEST (multi-pass MXU) to reproduce the inputs
    # exactly; bf16 is already exact at DEFAULT with f32 accumulation.
    precision = (lax.Precision.HIGHEST if x.dtype == jnp.float32
                 else lax.Precision.DEFAULT)

    kernel = functools.partial(_padding_downsample_kernel,
                               pad_rows=pad_rows, precision=precision)

    out3 = pl.pallas_call(
        kernel,
        out_shape=jax.ShapeDtypeStruct((n, r_out, lout), x.dtype),
        grid_spec=pltpu.PrefetchScalarGridSpec(
            num_scalar_prefetch=0,
            grid=(n // nb,),
            in_specs=[
                # nb full images per step; last two block dims == full array dims.
                pl.BlockSpec((nb, r_in, lin), lambda b: (b, 0, 0)),
                # Constant block index -> fetched once, stays resident in VMEM.
                pl.BlockSpec((lin, lout), lambda b: (0, 0)),
            ],
            out_specs=pl.BlockSpec((nb, r_out, lout), lambda b: (b, 0, 0)),
        ),
        compiler_params=pltpu.CompilerParams(
            dimension_semantics=("parallel",),
            vmem_limit_bytes=32 * 1024 * 1024),
    )(x3, sel)

    # Free reshape back to NCHW.
    return out3.reshape(n, c_out, h_out, w_out)


if __name__ == "__main__":
    key = jax.random.PRNGKey(0)
    # Typical CIFAR-ResNet shortcut usage: in_channels = planes // 2.
    N, C, H, W = 2, 4, 16, 16
    planes = 8                                   # pad = planes // 4 = 2 per side
    x = jax.random.normal(key, (N, C, H, W), jnp.float32)

    out = jax.block_until_ready(padding_downsampling(x, planes))

    # Pure-JAX reference of the PyTorch forward.
    p = planes // 4
    ref = jnp.pad(x[:, :, ::2, ::2], ((0, 0), (p, p), (0, 0), (0, 0)))

    assert out.shape == ref.shape, (out.shape, ref.shape)
    assert out.dtype == ref.dtype, (out.dtype, ref.dtype)
    assert jnp.allclose(out, ref, atol=1e-6), float(jnp.max(jnp.abs(out - ref)))
    print("KERNEL_OK")
</pallas_src>

<mosaic_0001>
module attributes {stable_mosaic.version = 11 : i64} {
  func.func @_padding_downsample_kernel(%arg0: i32, %arg1: memref<1x2x512xf32, #tpu.memory_space<vmem>>, %arg2: memref<512x128xf32, #tpu.memory_space<vmem>>, %arg3: memref<1x4x128xf32, #tpu.memory_space<vmem>>) attributes {dimension_semantics = [#tpu.dimension_semantics<parallel>], iteration_bounds = array<i64: 2>, scalar_prefetch = 0 : i64, scratch_operands = 0 : i64, tpu.core_type = #tpu.core_type<tc>, window_params = [{transform_indices = @transform_0, window_bounds = array<i64: 1, 2, 512>}, {pipeline_mode = #tpu.pipeline_mode<synchronous>, transform_indices = @transform_1, window_bounds = array<i64: 512, 128>}, {transform_indices = @transform_2, window_bounds = array<i64: 1, 4, 128>}]} {
    %c0 = arith.constant 0 : index
    %c0_0 = arith.constant 0 : index
    %c0_1 = arith.constant 0 : index
    %0 = vector.load %arg1[%c0, %c0_0, %c0_1] : memref<1x2x512xf32, #tpu.memory_space<vmem>>, vector<1x2x512xf32>
    %1 = vector.shape_cast %0 : vector<1x2x512xf32> to vector<2x512xf32>
    %c0_2 = arith.constant 0 : index
    %c0_3 = arith.constant 0 : index
    %2 = vector.load %arg2[%c0_2, %c0_3] : memref<512x128xf32, #tpu.memory_space<vmem>>, vector<512x128xf32>
    %cst = arith.constant dense<0.000000e+00> : vector<2x128xf32>
    %3 = tpu.matmul %1, %2, %cst {dimension_numbers = #tpu.dot_dimension_numbers<[1], [0], [0], [1], [0, 0, 1, 1], [], []>, precision = #tpu.contract_precision<fp32>} : vector<2x512xf32>, vector<512x128xf32>, vector<2x128xf32> -> vector<2x128xf32>
    %4 = vector.shape_cast %3 : vector<2x128xf32> to vector<1x2x128xf32>
    %cst_4 = arith.constant 0.000000e+00 : f32
    %5 = vector.broadcast %cst_4 : f32 to vector<1x1x128xf32>
    %c0_5 = arith.constant 0 : index
    %c0_6 = arith.constant 0 : index
    %c0_7 = arith.constant 0 : index
    %6 = vector.load %arg3[%c0_5, %c0_6, %c0_7] : memref<1x4x128xf32, #tpu.memory_space<vmem>>, vector<1x1x128xf32>
    tpu.vector_store %arg3[%c0_5, %c0_6, %c0_7], %5 {strides = array<i32>} : memref<1x4x128xf32, #tpu.memory_space<vmem>>, vector<1x1x128xf32>,
    %c0_8 = arith.constant 0 : index
    %c3 = arith.constant 3 : index
    %c0_9 = arith.constant 0 : index
    %7 = vector.load %arg3[%c0_8, %c3, %c0_9] : memref<1x4x128xf32, #tpu.memory_space<vmem>>, vector<1x1x128xf32>
    tpu.vector_store %arg3[%c0_8, %c3, %c0_9], %5 {strides = array<i32>} : memref<1x4x128xf32, #tpu.memory_space<vmem>>, vector<1x1x128xf32>,
    %c0_10 = arith.constant 0 : index
    %c1 = arith.constant 1 : index
    %c0_11 = arith.constant 0 : index
    %8 = vector.load %arg3[%c0_10, %c1, %c0_11] : memref<1x4x128xf32, #tpu.memory_space<vmem>>, vector<1x2x128xf32>
    tpu.vector_store %arg3[%c0_10, %c1, %c0_11], %4 {strides = array<i32>} : memref<1x4x128xf32, #tpu.memory_space<vmem>>, vector<1x2x128xf32>,
    return
  }
  func.func @transform_0(%arg0: i32) -> (i32, i32, i32) {
    %c0_i32 = arith.constant 0 : i32
    %c0_i32_0 = arith.constant 0 : i32
    %c0_i32_1 = arith.constant 0 : i32
    return %arg0, %c0_i32, %c0_i32_0 : i32, i32, i32
  }
  func.func @transform_1(%arg0: i32) -> (i32, i32) {
    %c0_i32 = arith.constant 0 : i32
    %c0_i32_0 = arith.constant 0 : i32
    %c0_i32_1 = arith.constant 0 : i32
    return %c0_i32, %c0_i32_0 : i32, i32
  }
  func.func @transform_2(%arg0: i32) -> (i32, i32, i32) {
    %c0_i32 = arith.constant 0 : i32
    %c0_i32_0 = arith.constant 0 : i32
    %c0_i32_1 = arith.constant 0 : i32
    return %arg0, %c0_i32, %c0_i32_0 : i32, i32, i32
  }
}

</mosaic_0001>

<bundles_post_ra>
// kernel: tpu_custom_call.1
= control target key start
LH: loop header
LB: loop body
LE: loop exit
PB: predicated region body
PF: predicated region fallthrough
CT: control target
= control target key end

     0   :  { %7 = vsyncpa [#allocation3], 0  ;;  %s3106_s0 = inlined_call_operand.hbm [shape: f32[2,2,512], index: 0, kind: input, shape index: {}]   ;;  %s3107_s1 = inlined_call_operand.hbm [shape: f32[512,128], index: 1, kind: input, shape index: {}]   ;;  %s3108_s2 = inlined_call_operand.hbm [shape: f32[2,4,128], index: 2, kind: output, shape index: {}]  }
   0x1   :  { %9 = vsyncpa [#allocation3 + $0x1], 0 }
   0x2   :  { %10 = vsyncpa [#allocation6], 0 }
   0x3   :  { %11 = vsyncpa [#allocation4], 0 }
   0x4   :  { %13 = vsyncpa [#allocation4 + $0x1], 0  ;;  %s1944_s9 = smov 0   ;;  %s1946_s10 = smov 0  }
   0x5   :  { %s1948_s11 = smov 0   ;;  %s1950_s12 = smov 0  }
   0x6 LB: > { %s108_s15 = sshll.u32 %s3107_s1, 4  ;;  %s1968_s16 = sadd.s32 4294967295, %s1923_s12   ;;  %s1923_s12 = sphi %s1950_s12, %s3223_s12   ;;  %s1919_s11 = sphi %s1948_s11, %s3222_s11   ;;  %s1915_s10 = sphi %s1946_s10, %s3221_s10   ;;  %s1911_s9 = sphi %s1944_s9, %s3220_s9   ;;  %s109_s15 = int_to_ptr.hbm [resolvable:$true] %s108_s15 }
   0x7   : > { %p1718_p0 = scmp.ge.s32.totalorder %s1923_s12, 1  ;;  %p40_p1 = scmp.eq.s32.totalorder %s1968_s16, 0 }
   0x8   : > { %p97_p2 = scmp.lt.s32.totalorder %s1923_s12, 3  ;;  %s1925_s18 = smov [#allocation5]  }
   0x9   : > { %s110_s19 = sshll.u32 %s1925_s18, 4  ;;  %s1926_s20 = smov 128   ;;  %s111_s19 = int_to_ptr.vmem [resolvable:$true] %s110_s19 }
   0xa   : > { %p1973_p3 = pnand %p1718_p0, %p97_p2  ;;  %s1927_s21 = smov 8  }
   0xb   : > { %s1717_s22 = sadd.s32 4294967294, %s1923_s12   ;;  %s1984_s23 = sadd.s32 1, %s1923_s12  }
   0xc   : > { %p1741_p4 = pneg %p1973_p3  ;;  %s26_s24 = sadd.s32 1, %s1919_s11 }
   0xd   : > { %s23_s25 = ssub.s32 %s1923_s12, %s1984_s23  ;;  %p33_p7 = scmp.ne.s32.totalorder %s1919_s11, %s1915_s10 }
   0xe   : > { %p1742_p6 = pnand %p1741_p4, %p40_p1  ;;  %p24_p8 = scmp.eq.s32.totalorder %s23_s25, 0 }
   0xf   : > { %p34_p9 = scmp.eq.s32.totalorder %s1923_s12, 0  ;;  %p39_p10 = scmp.ne.s32.totalorder %s1915_s10, %s1911_s9 }
  0x10   : > { %1744 = dma.hbm_to_vmem [thread:$0]  (!%p1742_p6), %s109_s15, 8192, %s111_s19, [#allocation6], %s1926_s20, %s1926_s20, %s1927_s21  }
  0x11   : > { %p84_p11 = scmp.eq.s32.totalorder %s1968_s16, 1  ;;  %p2000_p12 = por %p40_p1, %p39_p10 }
  0x12   : > { %s1996_s26 = scalar_select %p24_p8, %s1919_s11, %s26_s24  }
  0x13   : > { %p2004_p13 = por %p84_p11, %p33_p7  ;;  %p90_p0 = scmp.eq.s32.totalorder %s1717_s22, 1 }
  0x14   : > { %p35_p2 = por %p34_p9, %p33_p7  ;;  %s124_s29 = sand.u32 1, %s1919_s11  }
  0x15   : > { %p2009_p4 = por %p90_p0, %p39_p10  ;;  %p1754_p6 = scmp.lt.s32.totalorder %s1923_s12, 2 }
  0x16   : > { %s1721_s3 = sshll.u32 %s124_s29, 3  ;;  %s1732_s4 = sshll.u32 %s1923_s12, 3 }
  0x17   : > { %s133_s7 = scalar_lea.hbm %s3106_s0, %s1732_s4  ;;  %s128_s13 = scalar_lea.vmem [#allocation2], %s1721_s3 }
  0x18   : > { %s135_s8 = sshll.u32 %s133_s7, 4  ;;  %s137_s14 = sshll.u32 %s128_s13, 4  ;;  %s136_s8 = int_to_ptr.hbm [resolvable:$true] %s135_s8  ;;  %s138_s14 = int_to_ptr.vmem [resolvable:$true] %s137_s14 }
  0x19   : > { %p2018_p8 = pnand %p1754_p6, %p35_p2  ;;  %s125_s18 = scalar_lea.sflag [#allocation3], %s124_s29 }
  0x1a   : > { %s1823_s19 = sshra.s32 %s136_s8, 4  ;;  %s1830_s24 = scalar_lea.hbm %s3106_s0, 16  ;;  %s1824_s19 = int_to_ptr.hbm [resolvable:$true] %s1823_s19 }
  0x1b   : > { %s1825_s20 = scalar_lea.hbm %s1824_s19, 8  ;;  %p1827_p9 = pneg %p2018_p8 }
  0x1c   : > { %p1826_p7 = scmp.ne.s32.totalorder %s1824_s19, %s1825_s20  ;;  %p1831_p0 = scmp.lt.s32.totalorder %s1824_s19, %s3106_s0 }
  0x1d   : > { %p1832_p2 = scmp.lt.s32.totalorder %s1830_s24, %s1825_s20 }
  0x1e   : > { %p1828_p10 = pnand %p1827_p9, %p1826_p7 }
  0x1f   : > { %p1833_p6 = por %p1832_p2, %p1831_p0 }
  0x20   : > { %p1829_p11 = pneg %p1828_p10 }
  0x22   : > { %p1834_p5 = pnand %p1833_p6, %p1829_p11 }
  0x24   : > { %1837 = shalt.err (!%p1834_p5)
}
  0x25   : > { %1748 = dma.hbm_to_vmem [thread:$0]  (!%p2018_p8), %s136_s8, 128, %s138_s14, %s125_s18  }
  0x26   : > { %146 = sbr.rel (%p1973_p3) target bundleno = 395 (0x18b), region = 28 }
  0x2b   : > { %s2035_s29 = sand.u32 1, %s1915_s10  }
  0x2c   : > { %s1725_s4 = sshll.u32 %s2035_s29, 3  ;;  %s149_s5 = scalar_lea.sflag [#allocation3], %s2035_s29 }
  0x2d   : > { %s2039_s6 = scalar_lea.vmem [#allocation2], %s1725_s4 }
  0x2e   : > { %1898 = dma.done.wait (%p2000_p12), %s149_s5, 128  }
  0x2f   : > { %1900 = vsyncadd (%p2000_p12), %s149_s5, 4294967168 }
  0x30   : > { %1902 = dma.done.wait (%p40_p1), [#allocation6], 8192  }
  0x31   : > { %1904 = vsyncadd (%p40_p1), [#allocation6], 4294959104  ;;  %v195_v0 = vld [vmem:[#allocation5 + $0x78] sm:$0xff]  ;;  %v194_v1 = vld [vmem:[#allocation5 + $0x70] sm:$0xff]  ;;  %s1727_s17 = sshll.u32 %s2035_s29, 2  ;;  %s1729_s7 = sshll.u32 %s1968_s16, 2 }
  0x32   : > { %v193_v2 = vld [vmem:[#allocation5 + $0x68] sm:$0xff]  ;;  %v2049_v3 = vand.u32 4294901760, %v195_v0  ;;  %v2051_v4 = vand.u32 4294901760, %v194_v1  ;;  %v192_v6 = vld [vmem:[#allocation5 + $0x60] sm:$0xff]  ;;  %v191_v7 = vld [vmem:[#allocation5 + $0x58] sm:$0xff]  ;;  %s3067_s27 = scalar_lea.vmem [#allocation7], %s1727_s17  ;;  %s1632_s14 = scalar_lea.hbm %s3108_s2, %s1729_s7 }
  0x33   : > { %v2053_v5 = vand.u32 4294901760, %v193_v2  ;;  %v190_v8 = vld [vmem:[#allocation5 + $0x50] sm:$0xff]  ;;  %v2055_v9 = vand.u32 4294901760, %v192_v6  ;;  %v2057_v10 = vand.u32 4294901760, %v191_v7  ;;  %v189_v12 = vld [vmem:[#allocation5 + $0x48] sm:$0xff]  ;;  %v188_v13 = vld [vmem:[#allocation5 + $0x40] sm:$0xff] }
  0x34   : > { %v2059_v11 = vand.u32 4294901760, %v190_v8  ;;  %255 = vmatpush.msra.mxu0 %v2049_v3  ;;  %v2063_v14 = vsub.f32 %v195_v0, %v2049_v3  ;;  %v2066_v15 = vsub.f32 %v194_v1, %v2051_v4  ;;  %451 = vmatpush.msra.mxu3 %v2049_v3  ;;  %v2072_v17 = vand.u32 4294901760, %v189_v12  ;;  %v187_v18 = vld [vmem:[#allocation5 + $0x38] sm:$0xff]  ;;  %v186_v26 = vld [vmem:[#allocation5 + $0x30] sm:$0xff]  ;;  %v185_v34 = vld [vmem:[#allocation5 + $0x28] sm:$0xff]  ;;  %s1634_s15 = sshll.u32 %s3067_s27, 4  ;;  %s1635_s15 = int_to_ptr.vmem [resolvable:$true] %s1634_s15 }
  0x35   : > { %v2070_v16 = vsub.f32 %v193_v2, %v2053_v5  ;;  %v2075_v19 = vsub.f32 %v192_v6, %v2055_v9  ;;  %v2078_v20 = vsub.f32 %v191_v7, %v2057_v10  ;;  %v2088_v25 = vand.u32 4294901760, %v188_v13  ;;  %v184_v42 = vld [vmem:[#allocation5 + $0x20] sm:$0xff]  ;;  %v183_v48 = vld [vmem:[#allocation5 + $0x18] sm:$0xff]  ;;  %v182_v54 = vld [vmem:[#allocation5 + $0x10] sm:$0xff]  ;;  %s1636_s18 = sshll.u32 %s1632_s14, 4  ;;  %s1622_s19 = scalar_lea.sflag [#allocation4], %s2035_s29  ;;  %s1637_s18 = int_to_ptr.hbm [resolvable:$true] %s1636_s18 }
  0x36   : > { %v2081_v21 = vsub.f32 %v190_v8, %v2059_v11  ;;  %257 = vmatpush.msra.mxu0 %v2051_v4  ;;  %398 = vmatpush.msra.mxu2 %v2063_v14  ;;  %v297_v22 = vand.u32 4294901760, %v2063_v14  ;;  %v3124_v23 = vand.u32 4294901760, %v2066_v15  ;;  %v2092_v28 = vand.u32 4294901760, %v187_v18  ;;  %v179_v55 = vld [vmem:[%s2039_s6] sm:$0xff]  ;;  %v181_v62 = vld [vmem:[#allocation5 + $0x8] sm:$0xff]  ;;  %v180_v6 = vld [vmem:[#allocation5] sm:$0xff] }
  0x37   : > { %v3122_v24 = vand.u32 4294901760, %v2070_v16  ;;  %453 = vmatpush.msra.mxu3 %v2051_v4  ;;  %v3120_v27 = vand.u32 4294901760, %v2075_v19  ;;  %v2095_v29 = vsub.f32 %v189_v12, %v2072_v17  ;;  %v3118_v33 = vand.u32 4294901760, %v2078_v20  ;;  %v211_v60 = vld [vmem:[#allocation5 + $0xf8] sm:$0xff]  ;;  %245 = vst [vmem:[#allocation1] ss:$4 sm:$0xff] %v179_v55 }
  0x38   : > { %259 = vmatpush.msra.mxu0 %v2053_v5  ;;  %401 = vmatpush.msra.mxu2 %v2066_v15  ;;  %v298_v30 = vsub.f32 %v2063_v14, %v297_v22  ;;  %v304_v31 = vsub.f32 %v2066_v15, %v3124_v23  ;;  %v2110_v35 = vand.u32 4294901760, %v186_v26  ;;  %v3116_v36 = vand.u32 4294901760, %v2081_v21  ;;  %v210_v7 = vld [vmem:[#allocation5 + $0xf0] sm:$0xff]  ;;  %s1867_s16 = sshra.s32 %s1637_s18, 4  ;;  %s1873_s24 = scalar_lea.hbm %s3108_s2, 8  ;;  %s1868_s16 = int_to_ptr.hbm [resolvable:$true] %s1867_s16 }
  0x39   : > { %v310_v32 = vsub.f32 %v2070_v16, %v3122_v24  ;;  %455 = vmatpush.msra.mxu3 %v2053_v5  ;;  %v316_v39 = vsub.f32 %v2075_v19, %v3120_v27  ;;  %v2119_v40 = vsub.f32 %v188_v13, %v2088_v25  ;;  %v2122_v41 = vand.u32 4294901760, %v185_v34  ;;  %s1869_s20 = scalar_lea.hbm %s1868_s16, 4  ;;  %p1874_p12 = scmp.lt.s32.totalorder %s1868_s16, %s3108_s2 }
  0x3a   : > { %261 = vmatpush.msra.mxu0 %v2055_v9  ;;  %v299_v37 = vand.u32 4294901760, %v298_v30  ;;  %404 = vmatpush.msra.mxu2 %v2070_v16  ;;  %v305_v38 = vand.u32 4294901760, %v304_v31  ;;  %v322_v44 = vsub.f32 %v2078_v20, %v3118_v33  ;;  %v3115_v45 = vand.u32 4294901760, %v2095_v29  ;;  %p1870_p1 = scmp.ne.s32.totalorder %s1868_s16, %s1869_s20  ;;  %p1875_p8 = scmp.lt.s32.totalorder %s1873_s24, %s1869_s20 }
  0x3b   : > { %457 = vmatpush.msra.mxu3 %v2055_v9  ;;  %v311_v43 = vand.u32 4294901760, %v310_v32  ;;  %v2130_v46 = vsub.f32 %v187_v18, %v2092_v28  ;;  %v328_v47 = vsub.f32 %v2081_v21, %v3116_v36  ;;  %v317_v49 = vand.u32 4294901760, %v316_v39 }
  0x3c   : > { %263 = vmatpush.msra.mxu0 %v2057_v10  ;;  %300 = vmatpush.msra.mxu1 %v299_v37  ;;  %v2138_v50 = vand.u32 4294901760, %v184_v42  ;;  %v3114_v51 = vand.u32 4294901760, %v2119_v40  ;;  %v2142_v52 = vsub.f32 %v186_v26, %v2110_v35  ;;  %v2147_v53 = vsub.f32 %v185_v34, %v2122_v41  ;;  %v209_v34 = vld [vmem:[#allocation5 + $0xe8] sm:$0xff]  ;;  %p1871_p3 = pnand %p1870_p1, %p2004_p13  ;;  %p1876_p7 = por %p1875_p8, %p1874_p12 }
  0x3d   : > { %407 = vmatpush.msra.mxu2 %v2075_v19  ;;  %459 = vmatpush.msra.mxu3 %v2057_v10  ;;  %v323_v56 = vand.u32 4294901760, %v322_v44  ;;  %v334_v57 = vsub.f32 %v2095_v29, %v3115_v45  ;;  %v2154_v58 = vand.u32 4294901760, %v183_v48  ;;  %v3113_v59 = vand.u32 4294901760, %v2130_v46  ;;  %v204_v45 = vld [vmem:[#allocation5 + $0xc0] sm:$0xff] }
  0x3e   : > { %265 = vmatpush.msra.mxu0 %v2059_v11  ;;  %306 = vmatpush.msra.mxu1 %v305_v38  ;;  %v329_v61 = vand.u32 4294901760, %v328_v47  ;;  %v340_v63 = vsub.f32 %v2119_v40, %v3114_v51  ;;  %v2163_v0 = vand.u32 4294901760, %v182_v54  ;;  %v3111_v1 = vand.u32 4294901760, %v2142_v52  ;;  %v208_v47 = vld [vmem:[#allocation5 + $0xe0] sm:$0xff]  ;;  %p1872_p5 = pneg %p1871_p3 }
  0x3f   : > { %410 = vmatpush.msra.mxu2 %v2078_v20  ;;  %461 = vmatpush.msra.mxu3 %v2059_v11  ;;  %v2167_v2 = vsub.f32 %v184_v42, %v2138_v50  ;;  %v3110_v8 = vand.u32 4294901760, %v2147_v53  ;;  %v2172_v12 = vand.u32 4294901760, %v211_v60  ;;  %v335_v13 = vand.u32 4294901760, %v334_v57 }
  0x40   : > { %267 = vmatpush.msra.mxu0 %v2072_v17  ;;  %312 = vmatpush.msra.mxu1 %v311_v43  ;;  %v346_v18 = vsub.f32 %v2130_v46, %v3113_v59  ;;  %v2178_v26 = vand.u32 4294901760, %v181_v62  ;;  %v2181_v30 = vsub.f32 %v183_v48, %v2154_v58  ;;  %v2185_v31 = vand.u32 4294901760, %v180_v6  ;;  %p1877_p9 = pnand %p1876_p7, %p1872_p5 }
  0x41   : > { %413 = vmatpush.msra.mxu2 %v2081_v21  ;;  %463 = vmatpush.msra.mxu3 %v2072_v17  ;;  %v2187_v32 = vand.u32 4294901760, %v210_v7  ;;  %v341_v37 = vand.u32 4294901760, %v340_v63  ;;  %v352_v38 = vsub.f32 %v2142_v52, %v3111_v1  ;;  %v3109_v39 = vand.u32 4294901760, %v2167_v2 }
  0x42   : > { %269 = vmatpush.msra.mxu0 %v2088_v25  ;;  %318 = vmatpush.msra.mxu1 %v317_v49  ;;  %3153 = vst [vmem:[#allocation11_spill] sm:$0xff] %v2185_v31  ;;  %v2195_v42 = vsub.f32 %v182_v54, %v2163_v0  ;;  %v358_v43 = vsub.f32 %v2147_v53, %v3110_v8  ;;  %v347_v48 = vand.u32 4294901760, %v346_v18  ;;  %v3112_v49 = vand.u32 4294901760, %v2181_v30  ;;  %v206_v18 = vld [vmem:[#allocation5 + $0xd0] sm:$0xff] }
  0x43   : > { %416 = vmatpush.msra.mxu2 %v2095_v29  ;;  %465 = vmatpush.msra.mxu3 %v2088_v25  ;;  %v2203_v44 = vsub.f32 %v211_v60, %v2172_v12  ;;  %v2208_v54 = vsub.f32 %v181_v62, %v2178_v26  ;;  %v2210_v55 = vand.u32 4294901760, %v209_v34  ;;  %v2218_v57 = vsub.f32 %v210_v7, %v2187_v32  ;;  %v207_v60 = vld [vmem:[#allocation5 + $0xd8] sm:$0xff] }
  0x44   : > { %271 = vmatpush.msra.mxu0 %v2092_v28  ;;  %324 = vmatpush.msra.mxu1 %v323_v56  ;;  %v2215_v56 = vsub.f32 %v180_v6, %v2185_v31  ;;  %v364_v62 = vsub.f32 %v2167_v2, %v3109_v39  ;;  %v3117_v63 = vand.u32 4294901760, %v2195_v42  ;;  %v359_v6 = vand.u32 4294901760, %v358_v43  ;;  %v205_v43 = vld [vmem:[#allocation5 + $0xc8] sm:$0xff] }
  0x45   : > { %419 = vmatpush.msra.mxu2 %v2119_v40  ;;  %467 = vmatpush.msra.mxu3 %v2092_v28  ;;  %v3119_v7 = vand.u32 4294901760, %v2203_v44  ;;  %v2236_v39 = vsub.f32 %v209_v34, %v2210_v55  ;;  %v2238_v8 = vand.u32 4294901760, %v207_v60  ;;  %v2251_v51 = vand.u32 4294901760, %v206_v18 }
  0x46   : > { %273 = vmatpush.msra.mxu0 %v2110_v35  ;;  %330 = vmatpush.msra.mxu1 %v329_v61  ;;  %v353_v61 = vand.u32 4294901760, %v352_v38  ;;  %v3121_v38 = vand.u32 4294901760, %v2208_v54  ;;  %v3125_v1 = vand.u32 4294901760, %v2215_v56  ;;  %v376_v34 = vsub.f32 %v2195_v42, %v3117_v63 }
  0x47   : > { %422 = vmatpush.msra.mxu2 %v2130_v46  ;;  %469 = vmatpush.msra.mxu3 %v2110_v35  ;;  %v639_v36 = vsub.f32 %v2203_v44, %v3119_v7  ;;  %v3126_v63 = vand.u32 4294901760, %v2236_v39  ;;  %v2266_v33 = vsub.f32 %v207_v60, %v2238_v8  ;;  %v2273_v27 = vand.u32 4294901760, %v204_v45 }
  0x48   : > { %275 = vmatpush.msra.mxu0 %v2122_v41  ;;  %336 = vmatpush.msra.mxu1 %v335_v13  ;;  %v2225_v13 = vand.u32 4294901760, %v208_v47  ;;  %v388_v60 = vsub.f32 %v2215_v56, %v3125_v1  ;;  %v2281_v24 = vsub.f32 %v206_v18, %v2251_v51  ;;  %v3154_v14 = vand.u32 4294901760, %v2066_v15 }
  0x49   : > { %425 = vmatpush.msra.mxu2 %v2142_v52  ;;  %471 = vmatpush.msra.mxu3 %v2122_v41  ;;  %v651_v1 = vsub.f32 %v2236_v39, %v3126_v63  ;;  %v3156_v15 = vand.u32 4294901760, %v2070_v16  ;;  %v3158_v16 = vand.u32 4294901760, %v2075_v19  ;;  %v3160_v19 = vand.u32 4294901760, %v2078_v20 }
  0x4a   : > { %277 = vmatpush.msra.mxu0 %v2138_v50  ;;  %342 = vmatpush.msra.mxu1 %v341_v37  ;;  %v370_v37 = vsub.f32 %v2181_v30, %v3112_v49  ;;  %v365_v49 = vand.u32 4294901760, %v364_v62  ;;  %v2249_v59 = vsub.f32 %v208_v47, %v2225_v13  ;;  %v382_v47 = vsub.f32 %v2208_v54, %v3121_v38 }
  0x4b   : > { %428 = vmatpush.msra.mxu2 %v2147_v53  ;;  %473 = vmatpush.msra.mxu3 %v2138_v50  ;;  %v3162_v20 = vand.u32 4294901760, %v2081_v21  ;;  %v3164_v21 = vand.u32 4294901760, %v2095_v29  ;;  %v3166_v29 = vand.u32 4294901760, %v2119_v40  ;;  %v3168_v40 = vand.u32 4294901760, %v2130_v46 }
  0x4c   : > { %279 = vmatpush.msra.mxu0 %v2154_v58  ;;  %348 = vmatpush.msra.mxu1 %v347_v48  ;;  %v3123_v48 = vand.u32 4294901760, %v2218_v57  ;;  %v371_v62 = vand.u32 4294901760, %v370_v37  ;;  %v377_v37 = vand.u32 4294901760, %v376_v34  ;;  %v383_v34 = vand.u32 4294901760, %v382_v47 }
  0x4d   : > { %431 = vmatpush.msra.mxu2 %v2167_v2  ;;  %475 = vmatpush.msra.mxu3 %v2154_v58  ;;  %v3155_v47 = vand.u32 4294901760, %v2249_v59 }
  0x4e   : > { %281 = vmatpush.msra.mxu0 %v2163_v0  ;;  %354 = vmatpush.msra.mxu1 %v353_v61  ;;  %v2258_v61 = vand.u32 4294901760, %v205_v43  ;;  %v645_v7 = vsub.f32 %v2218_v57, %v3123_v48  ;;  %v640_v48 = vand.u32 4294901760, %v639_v36  ;;  %v2300_v36 = vsub.f32 %v204_v45, %v2273_v27 }
  0x4f   : > { %434 = vmatpush.msra.mxu2 %v2181_v30  ;;  %477 = vmatpush.msra.mxu3 %v2163_v0  ;;  %v657_v63 = vsub.f32 %v2249_v59, %v3155_v47 }
  0x50   : > { %283 = vmatpush.msra.mxu0 %v2178_v26  ;;  %360 = vmatpush.msra.mxu1 %v359_v6  ;;  %v203_v6 = vld [vmem:[#allocation5 + $0xb8] sm:$0xff]  ;;  %v2287_v23 = vsub.f32 %v205_v43, %v2258_v61  ;;  %v201_v43 = vld [vmem:[#allocation5 + $0xa8] sm:$0xff] }
  0x51   : > { %437 = vmatpush.msra.mxu2 %v2195_v42  ;;  %479 = vmatpush.msra.mxu3 %v2178_v26  ;;  %v2294_v38 = vand.u32 4294901760, %v203_v6  ;;  %v2319_v18 = vand.u32 4294901760, %v201_v43 }
  0x52   : > { %285 = vmatpush.msra.mxu0 %v2185_v31  ;;  %366 = vmatpush.msra.mxu1 %v365_v49  ;;  %v202_v49 = vld [vmem:[#allocation5 + $0xb0] sm:$0xff] }
  0x53   : > { %440 = vmatpush.msra.mxu2 %v2208_v54  ;;  %481 = vmatpush.msra.mxu3 %v2185_v31  ;;  %v2307_v31 = vand.u32 4294901760, %v202_v49  ;;  %v2317_v47 = vsub.f32 %v203_v6, %v2294_v38 }
  0x54   : > { %492 = vmatpush.msrb.mxu0 %v297_v22  ;;  %372 = vmatpush.msra.mxu1 %v371_v62  ;;  %v646_v22 = vand.u32 4294901760, %v645_v7  ;;  %v389_v62 = vand.u32 4294901760, %v388_v60  ;;  %v200_v7 = vld [vmem:[#allocation5 + $0xa0] sm:$0xff]  ;;  %v3157_v60 = vand.u32 4294901760, %v2266_v33 }
  0x55   : > { %443 = vmatpush.msra.mxu2 %v2215_v56  ;;  %641 = vmatpush.msrb.mxu3 %v640_v48  ;;  %v2329_v6 = vsub.f32 %v202_v49, %v2307_v31  ;;  %v2331_v45 = vand.u32 4294901760, %v200_v7  ;;  %v2342_v49 = vsub.f32 %v201_v43, %v2319_v18 }
  0x56   : > { %496 = vmatpush.msrb.mxu0 %v3154_v14  ;;  %378 = vmatpush.msra.mxu1 %v377_v37  ;;  %v652_v37 = vand.u32 4294901760, %v651_v1  ;;  %v663_v14 = vsub.f32 %v2266_v33, %v3157_v60  ;;  %v658_v1 = vand.u32 4294901760, %v657_v63 }
  0x57   : > { %596 = vmatpush.msrb.mxu2 %v2172_v12  ;;  %647 = vmatpush.msrb.mxu3 %v646_v22  ;;  %v3161_v22 = vand.u32 4294901760, %v2287_v23  ;;  %v2355_v43 = vsub.f32 %v200_v7, %v2331_v45 }
  0x58   : > { %500 = vmatpush.msrb.mxu0 %v3156_v15  ;;  %384 = vmatpush.msra.mxu1 %v383_v34  ;;  %v199_v15 = vld [vmem:[#allocation5 + $0x98] sm:$0xff]  ;;  %v3159_v34 = vand.u32 4294901760, %v2281_v24  ;;  %v664_v63 = vand.u32 4294901760, %v663_v14 }
  0x59   : > { %598 = vmatpush.msrb.mxu2 %v2187_v32  ;;  %653 = vmatpush.msrb.mxu3 %v652_v37  ;;  %v2344_v48 = vand.u32 4294901760, %v199_v15 }
  0x5a   : > { %504 = vmatpush.msrb.mxu0 %v3158_v16  ;;  %390 = vmatpush.msra.mxu1 %v389_v62  ;;  %v669_v60 = vsub.f32 %v2281_v24, %v3159_v34  ;;  %v675_v62 = vsub.f32 %v2287_v23, %v3161_v22  ;;  %v246_v16 = vld.sshfl [vmem:[#allocation1] sm:$0xff pattern:$0x73625140]  ;;  %v198_v22 = vld [vmem:[#allocation5 + $0x90] sm:$0xff] }
  0x5b   : > { %600 = vmatpush.msrb.mxu2 %v2210_v55  ;;  %659 = vmatpush.msrb.mxu3 %v658_v1  ;;  %v2357_v34 = vand.u32 4294901760, %v246_v16  ;;  %v3165_v1 = vand.u32 4294901760, %v2317_v47  ;;  %v2367_v7 = vand.u32 4294901760, %v198_v22  ;;  %v2370_v14 = vsub.f32 %v199_v15, %v2344_v48 }
  0x5c   : > { %508 = vmatpush.msrb.mxu0 %v3160_v19  ;;  %559 = vmatpush.msrb.mxu1 %v2049_v3  ;;  %v3163_v3 = vand.u32 4294901760, %v2300_v36  ;;  %v670_v37 = vand.u32 4294901760, %v669_v60 }
  0x5d   : > { %602 = vmatpush.msrb.mxu2 %v2225_v13  ;;  %665 = vmatpush.msrb.mxu3 %v664_v63  ;;  %v687_v60 = vsub.f32 %v2317_v47, %v3165_v1  ;;  %v2381_v1 = vsub.f32 %v246_v16, %v2357_v34  ;;  %v2394_v16 = vsub.f32 %v198_v22, %v2367_v7 }
  0x5e   : > { %512 = vmatpush.msrb.mxu0 %v3162_v20  ;;  %561 = vmatpush.msrb.mxu1 %v2051_v4  ;;  %v681_v19 = vsub.f32 %v2300_v36, %v3163_v3  ;;  %v676_v4 = vand.u32 4294901760, %v675_v62  ;;  %v197_v20 = vld [vmem:[#allocation5 + $0x88] sm:$0xff]  ;;  %v3167_v62 = vand.u32 4294901760, %v2329_v6  ;;  %v196_v3 = vld [vmem:[#allocation5 + $0x80] sm:$0xff] }
  0x5f   : > { %604 = vmatpush.msrb.mxu2 %v2238_v8  ;;  %671 = vmatpush.msrb.mxu3 %v670_v37  ;;  %v2383_v15 = vand.u32 4294901760, %v197_v20  ;;  %v2399_v46 = vand.u32 4294901760, %v196_v3 }
  0x60   : > { %516 = vmatpush.msrb.mxu0 %v3164_v21  ;;  %563 = vmatpush.msrb.mxu1 %v2053_v5  ;;  %v682_v5 = vand.u32 4294901760, %v681_v19  ;;  %v693_v63 = vsub.f32 %v2329_v6, %v3167_v62  ;;  %v704_v21 = vand.u32 4294901760, %v2355_v43  ;;  %v3169_v19 = vand.u32 4294901760, %v2342_v49 }
  0x61   : > { %606 = vmatpush.msrb.mxu2 %v2251_v51  ;;  %677 = vmatpush.msrb.mxu3 %v676_v4  ;;  %v3170_v62 = vand.u32 4294901760, %v2142_v52  ;;  %v2407_v22 = vsub.f32 %v197_v20, %v2383_v15  ;;  %v3171_v52 = vand.u32 4294901760, %v2147_v53  ;;  %v2421_v53 = vsub.f32 %v196_v3, %v2399_v46 }
  0x62   : > { %520 = vmatpush.msrb.mxu0 %v3166_v29  ;;  %565 = vmatpush.msrb.mxu1 %v2055_v9  ;;  %v688_v9 = vand.u32 4294901760, %v687_v60  ;;  %v699_v37 = vsub.f32 %v2342_v49, %v3169_v19  ;;  %v710_v29 = vand.u32 4294901760, %v2370_v14  ;;  %v705_v4 = vsub.f32 %v2355_v43, %v704_v21 }
  0x63   : > { %608 = vmatpush.msrb.mxu2 %v2258_v61  ;;  %683 = vmatpush.msrb.mxu3 %v682_v5  ;;  %v288_v60 = vand.u32 4294901760, %v2381_v1  ;;  %v3172_v19 = vand.u32 4294901760, %v2167_v2  ;;  %v3174_v3 = vand.u32 4294901760, %v2195_v42  ;;  %v3176_v42 = vand.u32 4294901760, %v2215_v56 }
  0x64   : > { %524 = vmatpush.msrb.mxu0 %v3168_v40  ;;  %567 = vmatpush.msrb.mxu1 %v2057_v10  ;;  %v694_v10 = vand.u32 4294901760, %v693_v63  ;;  %v700_v5 = vand.u32 4294901760, %v699_v37  ;;  %v711_v63 = vsub.f32 %v2370_v14, %v710_v29  ;;  %v716_v40 = vand.u32 4294901760, %v2394_v16 }
  0x65   : > { %610 = vmatpush.msrb.mxu2 %v2273_v27  ;;  %689 = vmatpush.msrb.mxu3 %v688_v9  ;;  %v289_v20 = vsub.f32 %v2381_v1, %v288_v60  ;;  %v722_v9 = vand.u32 4294901760, %v2407_v22 }
  0x66   : > { %528 = vmatpush.msrb.mxu0 %v3170_v62  ;;  %569 = vmatpush.msrb.mxu1 %v2059_v11  ;;  %v247_v11 = vld.sshfl [vmem:[#allocation1 + $0x8] sm:$0xff pattern:$0x73625140]  ;;  %v3173_v62 = vand.u32 4294901760, %v2181_v30  ;;  %v717_v2 = vsub.f32 %v2394_v16, %v716_v40 }
  0x67   : > { %612 = vmatpush.msrb.mxu2 %v2294_v38  ;;  %695 = vmatpush.msrb.mxu3 %v694_v10  ;;  %v2426_v37 = vand.u32 4294901760, %v247_v11  ;;  %v728_v10 = vand.u32 4294901760, %v2421_v53  ;;  %v290_v30 = vand.u32 4294901760, %v289_v20  ;;  %v218_v20 = vld [vmem:[#allocation5 + $0x130] sm:$0xff] }
  0x68   : > { %532 = vmatpush.msrb.mxu0 %v3171_v52  ;;  %571 = vmatpush.msrb.mxu1 %v2072_v17  ;;  %v706_v17 = vand.u32 4294901760, %v705_v4  ;;  %v3175_v52 = vand.u32 4294901760, %v2208_v54 }
  0x69   : > { %614 = vmatpush.msrb.mxu2 %v2307_v31  ;;  %701 = vmatpush.msrb.mxu3 %v700_v5  ;;  %v2444_v4 = vsub.f32 %v247_v11, %v2426_v37  ;;  %v729_v5 = vsub.f32 %v2421_v53, %v728_v10 }
  0x6a   : > { %536 = vmatpush.msrb.mxu0 %v3172_v19  ;;  %573 = vmatpush.msrb.mxu1 %v2088_v25  ;;  %v712_v25 = vand.u32 4294901760, %v711_v63  ;;  %v219_v63 = vld [vmem:[#allocation5 + $0x138] sm:$0xff] }
  0x6b   : > { %616 = vmatpush.msrb.mxu2 %v2319_v18  ;;  %707 = vmatpush.msrb.mxu3 %v706_v17  ;;  %v629_v11 = vand.u32 4294901760, %v2444_v4 }
  0x6c   : > { %540 = vmatpush.msrb.mxu0 %v3173_v62  ;;  %575 = vmatpush.msrb.mxu1 %v2092_v28  ;;  %v723_v28 = vsub.f32 %v2407_v22, %v722_v9 }
  0x6d   : > { %618 = vmatpush.msrb.mxu2 %v2331_v45  ;;  %713 = vmatpush.msrb.mxu3 %v712_v25  ;;  %v2606_v25 = vand.u32 4294901760, %v219_v63 }
  0x6e   : > { %544 = vmatpush.msrb.mxu0 %v3174_v3  ;;  %577 = vmatpush.msrb.mxu1 %v2110_v35  ;;  %v718_v35 = vand.u32 4294901760, %v717_v2  ;;  %v724_v54 = vand.u32 4294901760, %v723_v28  ;;  %v217_v3 = vld [vmem:[#allocation5 + $0x128] sm:$0xff] }
  0x6f   : > { %620 = vmatpush.msrb.mxu2 %v2344_v48  ;;  %291 = vmatmul.f32.vlgmr.msra.gmra.mxu0 %v290_v30  ;;  %v2619_v30 = vand.u32 4294901760, %v218_v20 }
  0x70   : > { %548 = vmatpush.msrb.mxu0 %v3175_v52  ;;  %579 = vmatpush.msrb.mxu1 %v2122_v41  ;;  %v730_v41 = vand.u32 4294901760, %v729_v5  ;;  %v216_v52 = vld [vmem:[#allocation5 + $0x120] sm:$0xff] }
  0x71   : > { %622 = vmatpush.msrb.mxu2 %v2367_v7  ;;  %719 = vmatpush.msrb.mxu3 %v718_v35 }
  0x72   : > { %552 = vmatpush.msrb.mxu0 %v3176_v42  ;;  %581 = vmatpush.msrb.mxu1 %v2138_v50  ;;  %v630_v50 = vsub.f32 %v2444_v4, %v629_v11  ;;  %v2631_v42 = vand.u32 4294901760, %v217_v3 }
  0x73   : > { %624 = vmatpush.msrb.mxu2 %v2383_v15  ;;  %725 = vmatpush.msrb.mxu3 %v724_v54  ;;  %v2635_v54 = vsub.f32 %v219_v63, %v2606_v25 }
  0x74   : > { %739 = vmatpush.msra.mxu0 %v2203_v44  ;;  %583 = vmatpush.msrb.mxu1 %v2154_v58  ;;  %v3177_v58 = vand.u32 4294901760, %v2203_v44  ;;  %v631_v56 = vand.u32 4294901760, %v630_v50  ;;  %v3180_v44 = vand.u32 4294901760, %v2236_v39 }
  0x75   : > { %446 = vmatmul.f32.vlgmr.msra.gmra.mxu2 %v2381_v1  ;;  %485 = vmatmul.f32.vlgmr.msra.gmra.mxu3 %v288_v60  ;;  %v3179_v1 = vld [vmem:[#allocation11_spill] sm:$0xff] }
  0x76   : > { %742 = vmatpush.msra.mxu0 %v2218_v57  ;;  %585 = vmatpush.msrb.mxu1 %v2163_v0  ;;  %v3178_v0 = vand.u32 4294901760, %v2218_v57  ;;  %v3188_v57 = vand.u32 4294901760, %v2342_v49 }
  0x77   : > { %626 = vmatpush.msrb.mxu2 %v2399_v46  ;;  %731 = vmatpush.msrb.mxu3 %v730_v41  ;;  %v215_v41 = vld [vmem:[#allocation5 + $0x118] sm:$0xff] }
  0x78   : > { %745 = vmatpush.msra.mxu0 %v2236_v39  ;;  %587 = vmatpush.msrb.mxu1 %v2178_v26  ;;  %v3181_v26 = vand.u32 4294901760, %v2249_v59 }
  0x79   : > { %833 = vmatpush.msra.mxu2 %v3177_v58  ;;  %392 = vmatmul.f32.vlgmr.msra.gmra.mxu1 %v2357_v34  ;;  %v2643_v58 = vand.u32 4294901760, %v216_v52 }
  0x7a   : > { %748 = vmatpush.msra.mxu0 %v2249_v59  ;;  %900 = vmatpush.msra.mxu3 %v2172_v12  ;;  %v3183_v59 = vand.u32 4294901760, %v2281_v24 }
  0x7b   : > { %837 = vmatpush.msra.mxu2 %v3178_v0  ;;  %589 = vmatpush.msrb.mxu1 %v3179_v1 }
  0x7c   : > { %751 = vmatpush.msra.mxu0 %v2266_v33  ;;  %902 = vmatpush.msra.mxu3 %v2187_v32 }
  0x7d   : > { %792 = vmatpush.msra.mxu1 %v2172_v12  ;;  %841 = vmatpush.msra.mxu2 %v3180_v44  ;;  %v3182_v12 = vand.u32 4294901760, %v2266_v33  ;;  %v3184_v33 = vand.u32 4294901760, %v2287_v23  ;;  %v214_v44 = vld [vmem:[#allocation5 + $0x110] sm:$0xff] }
  0x7e   : > { %632 = vmatmul.f32.vlgmr.msrb.gmra.mxu2 %v631_v56  ;;  %754 = vmatpush.msra.mxu0 %v2281_v24  ;;  %v227_v24 = vld [vmem:[#allocation5 + $0x178] sm:$0xff]  ;;  %v2647_v56 = vsub.f32 %v218_v20, %v2619_v30 }
  0x7f   : > { %794 = vmatpush.msra.mxu1 %v2187_v32  ;;  %845 = vmatpush.msra.mxu2 %v3181_v26  ;;  %v3185_v32 = vand.u32 4294901760, %v2300_v36  ;;  %v2520_v39 = vand.u32 4294901760, %v227_v24 }
  0x80   : > { %904 = vmatpush.msra.mxu3 %v2210_v55  ;;  %554 = vmatmul.f32.vlgmr.msrb.gmra.mxu0 %v2357_v34 }
  0x81   : > { %733 = vmatmul.f32.vlgmr.msrb.gmra.mxu3 %v2426_v37  ;;  %757 = vmatpush.msra.mxu0 %v2287_v23  ;;  %v226_v23 = vld [vmem:[#allocation5 + $0x170] sm:$0xff] }
  0x82   : > { %796 = vmatpush.msra.mxu1 %v2210_v55  ;;  %849 = vmatpush.msra.mxu2 %v3182_v12  ;;  %v225_v55 = vld [vmem:[#allocation5 + $0x168] sm:$0xff] }
  0x83   : > { %906 = vmatpush.msra.mxu3 %v2225_v13  ;;  %591 = vmatmul.f32.vlgmr.msrb.gmra.mxu1 %v2357_v34 }
  0x84   : > { %760 = vmatpush.msra.mxu0 %v2300_v36  ;;  %798 = vmatpush.msra.mxu1 %v2225_v13  ;;  %v2527_v13 = vand.u32 4294901760, %v226_v23  ;;  %v223_v36 = vld [vmem:[#allocation5 + $0x158] sm:$0xff] }
  0x85   : > { %853 = vmatpush.msra.mxu2 %v3183_v59  ;;  %908 = vmatpush.msra.mxu3 %v2238_v8  ;;  %v2551_v34 = vand.u32 4294901760, %v223_v36  ;;  %v2657_v59 = vand.u32 4294901760, %v215_v41 }
  0x86   : > { %763 = vmatpush.msra.mxu0 %v2317_v47  ;;  %800 = vmatpush.msra.mxu1 %v2238_v8  ;;  %v3186_v8 = vand.u32 4294901760, %v2317_v47  ;;  %v2547_v47 = vsub.f32 %v226_v23, %v2527_v13  ;;  %v2669_v23 = vand.u32 4294901760, %v214_v44 }
  0x87   : > { %857 = vmatpush.msra.mxu2 %v3184_v33  ;;  %910 = vmatpush.msra.mxu3 %v2251_v51  ;;  %v3132_v33 = vand.u32 4294901760, %v2635_v54 }
  0x88   : > { %766 = vmatpush.msra.mxu0 %v2329_v6  ;;  %802 = vmatpush.msra.mxu1 %v2251_v51  ;;  %v3187_v51 = vand.u32 4294901760, %v2329_v6  ;;  %v222_v6 = vld [vmem:[#allocation5 + $0x150] sm:$0xff] }
  0x89   : > { %861 = vmatpush.msra.mxu2 %v3185_v32  ;;  %912 = vmatpush.msra.mxu3 %v2258_v61  ;;  %v2661_v32 = vsub.f32 %v217_v3, %v2631_v42  ;;  %v2698_v3 = vsub.f32 %v214_v44, %v2669_v23 }
  0x8a   : > { %769 = vmatpush.msra.mxu0 %v2342_v49  ;;  %804 = vmatpush.msra.mxu1 %v2258_v61  ;;  %v2534_v61 = vand.u32 4294901760, %v225_v55 }
  0x8b   : > { %865 = vmatpush.msra.mxu2 %v3186_v8  ;;  %914 = vmatpush.msra.mxu3 %v2273_v27 }
  0x8c   : > { %772 = vmatpush.msra.mxu0 %v2355_v43  ;;  %806 = vmatpush.msra.mxu1 %v2273_v27  ;;  %v224_v27 = vld [vmem:[#allocation5 + $0x160] sm:$0xff]  ;;  %v2558_v49 = vsub.f32 %v225_v55, %v2534_v61  ;;  %v221_v43 = vld [vmem:[#allocation5 + $0x148] sm:$0xff]  ;;  %v2673_v55 = vsub.f32 %v216_v52, %v2643_v58 }
  0x8d   : > { %869 = vmatpush.msra.mxu2 %v3187_v51  ;;  %916 = vmatpush.msra.mxu3 %v2294_v38  ;;  %v2582_v60 = vand.u32 4294901760, %v221_v43  ;;  %v3131_v51 = vand.u32 4294901760, %v2647_v56 }
  0x8e   : > { %775 = vmatpush.msra.mxu0 %v2370_v14  ;;  %808 = vmatpush.msra.mxu1 %v2294_v38  ;;  %v2537_v38 = vsub.f32 %v227_v24, %v2520_v39  ;;  %v2562_v14 = vand.u32 4294901760, %v222_v6 }
  0x8f   : > { %873 = vmatpush.msra.mxu2 %v3188_v57  ;;  %918 = vmatpush.msra.mxu3 %v2307_v31  ;;  %v2609_v2 = vsub.f32 %v221_v43, %v2582_v60  ;;  %v213_v57 = vld [vmem:[#allocation5 + $0x108] sm:$0xff]  ;;  %v3129_v43 = vand.u32 4294901760, %v2661_v32 }
  0x90   : > { %778 = vmatpush.msra.mxu0 %v2394_v16  ;;  %810 = vmatpush.msra.mxu1 %v2307_v31  ;;  %v2544_v31 = vand.u32 4294901760, %v224_v27  ;;  %v2690_v63 = vand.u32 4294901760, %v213_v57 }
  0x91   : > { %877 = vmatpush.msra.mxu2 %v704_v21  ;;  %920 = vmatpush.msra.mxu3 %v2319_v18  ;;  %v3134_v5 = vand.u32 4294901760, %v2609_v2 }
  0x92   : > { %781 = vmatpush.msra.mxu0 %v2407_v22  ;;  %812 = vmatpush.msra.mxu1 %v2319_v18  ;;  %v979_v18 = vand.u32 4294901760, %v2537_v38  ;;  %v2569_v21 = vsub.f32 %v224_v27, %v2544_v31  ;;  %v991_v22 = vand.u32 4294901760, %v2558_v49 }
  0x93   : > { %881 = vmatpush.msra.mxu2 %v710_v29  ;;  %922 = vmatpush.msra.mxu3 %v2331_v45  ;;  %v2574_v29 = vsub.f32 %v223_v36, %v2551_v34  ;;  %v1016_v12 = vsub.f32 %v2609_v2, %v3134_v5 }
  0x94   : > { %784 = vmatpush.msra.mxu0 %v2421_v53  ;;  %814 = vmatpush.msra.mxu1 %v2331_v45  ;;  %v985_v45 = vand.u32 4294901760, %v2547_v47  ;;  %v980_v16 = vsub.f32 %v2537_v38, %v979_v18  ;;  %v3140_v53 = vand.u32 4294901760, %v2569_v21  ;;  %v992_v62 = vsub.f32 %v2558_v49, %v991_v22 }
  0x95   : > { %885 = vmatpush.msra.mxu2 %v716_v40  ;;  %924 = vmatpush.msra.mxu3 %v2344_v48  ;;  %v3137_v17 = vand.u32 4294901760, %v2574_v29  ;;  %v1017_v36 = vand.u32 4294901760, %v1016_v12  ;;  %v3135_v12 = vand.u32 4294901760, %v2698_v3 }
  0x96   : > { %787 = vmatmul.f32.vlgmr.msra.gmra.mxu0 %v2444_v4  ;;  %816 = vmatpush.msra.mxu1 %v2344_v48  ;;  %v220_v48 = vld [vmem:[#allocation5 + $0x140] sm:$0xff]  ;;  %v986_v40 = vsub.f32 %v2547_v47, %v985_v45  ;;  %v993_v35 = vand.u32 4294901760, %v992_v62  ;;  %v248_v4 = vld.sshfl [vmem:[#allocation1 + $0x10] sm:$0xff pattern:$0x73625140]  ;;  %v3128_v62 = vand.u32 4294901760, %v2673_v55 }
  0x97   : > { %937 = vmatpush.msrb.mxu0 %v2520_v39  ;;  %889 = vmatpush.msra.mxu2 %v722_v9  ;;  %v2595_v19 = vand.u32 4294901760, %v220_v48  ;;  %v981_v9 = vand.u32 4294901760, %v980_v16  ;;  %v2651_v26 = vand.u32 4294901760, %v248_v4  ;;  %v243_v16 = vld [vmem:[#allocation5 + $0x1f8] sm:$0xff] }
  0x98   : > { %926 = vmatpush.msra.mxu3 %v2367_v7  ;;  %818 = vmatpush.msra.mxu1 %v2367_v7  ;;  %v2588_v7 = vsub.f32 %v222_v6, %v2562_v14  ;;  %v1028_v6 = vsub.f32 %v2635_v54, %v3132_v33  ;;  %v1046_v44 = vsub.f32 %v2673_v55, %v3128_v62 }
  0x99   : > { %939 = vmatpush.msrb.mxu0 %v2527_v13  ;;  %893 = vmatpush.msra.mxu2 %v728_v10  ;;  %v998_v10 = vsub.f32 %v2569_v21, %v3140_v53  ;;  %v2622_v28 = vsub.f32 %v220_v48, %v2595_v19  ;;  %v2678_v27 = vsub.f32 %v248_v4, %v2651_v26  ;;  %v235_v53 = vld [vmem:[#allocation5 + $0x1b8] sm:$0xff] }
  0x9a   : > { %928 = vmatpush.msra.mxu3 %v2383_v15  ;;  %895 = vmatmul.f32.vlgmr.msra.gmra.mxu2 %v2426_v37  ;;  %v2686_v48 = vsub.f32 %v215_v41, %v2657_v59  ;;  %v1029_v52 = vand.u32 4294901760, %v1028_v6  ;;  %v2715_v41 = vsub.f32 %v213_v57, %v2690_v63 }
  0x9b   : > { %941 = vmatpush.msrb.mxu0 %v2534_v61  ;;  %1080 = vmatpush.msrb.mxu2 %v2537_v38  ;;  %v999_v50 = vand.u32 4294901760, %v998_v10  ;;  %v3133_v0 = vand.u32 4294901760, %v2622_v28  ;;  %v2703_v10 = vand.u32 4294901760, %v243_v16 }
  0x9c   : > { %820 = vmatpush.msra.mxu1 %v2383_v15  ;;  %930 = vmatpush.msra.mxu3 %v2399_v46  ;;  %v3136_v15 = vand.u32 4294901760, %v2588_v7 }
  0x9d   : > { %932 = vmatmul.f32.vlgmr.msra.gmra.mxu3 %v2426_v37  ;;  %943 = vmatpush.msrb.mxu0 %v2544_v31  ;;  %v987_v37 = vand.u32 4294901760, %v986_v40  ;;  %v1022_v8 = vsub.f32 %v2622_v28, %v3133_v0  ;;  %v212_v40 = vld [vmem:[#allocation5 + $0x100] sm:$0xff] }
  0x9e   : > { %1083 = vmatpush.msrb.mxu2 %v2547_v47  ;;  %1133 = vmatpush.msrb.mxu3 %v2520_v39  ;;  %v2709_v4 = vand.u32 4294901760, %v212_v40 }
  0x9f   : > { %822 = vmatpush.msra.mxu1 %v2399_v46  ;;  %945 = vmatpush.msrb.mxu0 %v2551_v34  ;;  %v1004_v46 = vsub.f32 %v2574_v29, %v3137_v17  ;;  %v1023_v20 = vand.u32 4294901760, %v1022_v8  ;;  %v240_v8 = vld [vmem:[#allocation5 + $0x1e0] sm:$0xff] }
  0xa0   : > { %826 = vmatmul.f32.vlgmr.msra.gmra.mxu1 %v629_v11  ;;  %1086 = vmatpush.msrb.mxu2 %v2558_v49  ;;  %v1010_v11 = vsub.f32 %v2588_v7, %v3136_v15 }
  0xa1   : > { %982 = vmatpush.msrb.mxu1 %v981_v9  ;;  %1135 = vmatpush.msrb.mxu3 %v2527_v13  ;;  %v1005_v1 = vand.u32 4294901760, %v1004_v46  ;;  %v1034_v9 = vsub.f32 %v2647_v56, %v3131_v51  ;;  %v242_v46 = vld [vmem:[#allocation5 + $0x1f0] sm:$0xff] }
  0xa2   : > { %947 = vmatpush.msrb.mxu0 %v2562_v14  ;;  %1089 = vmatpush.msrb.mxu2 %v2569_v21  ;;  %v1011_v24 = vand.u32 4294901760, %v1010_v11  ;;  %v3130_v11 = vand.u32 4294901760, %v2686_v48 }
  0xa3   : > { %988 = vmatpush.msrb.mxu1 %v987_v37  ;;  %1137 = vmatpush.msrb.mxu3 %v2534_v61  ;;  %v3142_v37 = vand.u32 4294901760, %v2678_v27 }
  0xa4   : > { %949 = vmatpush.msrb.mxu0 %v2582_v60  ;;  %1092 = vmatpush.msrb.mxu2 %v2574_v29 }
  0xa5   : > { %994 = vmatpush.msrb.mxu1 %v993_v35  ;;  %1139 = vmatpush.msrb.mxu3 %v2544_v31  ;;  %v1040_v35 = vsub.f32 %v2661_v32, %v3129_v43  ;;  %v971_v57 = vsub.f32 %v2678_v27, %v3142_v37  ;;  %v239_v43 = vld [vmem:[#allocation5 + $0x1d8] sm:$0xff]  ;;  %v234_v37 = vld [vmem:[#allocation5 + $0x1b0] sm:$0xff] }
  0xa6   : > { %951 = vmatpush.msrb.mxu0 %v2595_v19  ;;  %1095 = vmatpush.msrb.mxu2 %v2588_v7  ;;  %v2756_v0 = vand.u32 4294901760, %v239_v43 }
  0xa7   : > { %1000 = vmatpush.msrb.mxu1 %v999_v50  ;;  %1141 = vmatpush.msrb.mxu3 %v2551_v34  ;;  %v241_v50 = vld [vmem:[#allocation5 + $0x1e8] sm:$0xff]  ;;  %v1041_v6 = vand.u32 4294901760, %v1040_v35  ;;  %v1047_v35 = vand.u32 4294901760, %v1046_v44  ;;  %v972_v51 = vand.u32 4294901760, %v971_v57 }
  0xa8   : > { %953 = vmatpush.msrb.mxu0 %v2606_v25  ;;  %1098 = vmatpush.msrb.mxu2 %v2609_v2  ;;  %v2739_v62 = vand.u32 4294901760, %v241_v50 }
  0xa9   : > { %1006 = vmatpush.msrb.mxu1 %v1005_v1  ;;  %1143 = vmatpush.msrb.mxu3 %v2562_v14  ;;  %v1035_v1 = vand.u32 4294901760, %v1034_v9  ;;  %v2737_v9 = vsub.f32 %v212_v40, %v2709_v4  ;;  %v1058_v40 = vsub.f32 %v2698_v3, %v3135_v12 }
  0xaa   : > { %955 = vmatpush.msrb.mxu0 %v2619_v30  ;;  %1101 = vmatpush.msrb.mxu2 %v2622_v28  ;;  %v2761_v12 = vsub.f32 %v241_v50, %v2739_v62 }
  0xab   : > { %1012 = vmatpush.msrb.mxu1 %v1011_v24  ;;  %1145 = vmatpush.msrb.mxu3 %v2582_v60  ;;  %v2722_v24 = vand.u32 4294901760, %v242_v46  ;;  %v3141_v5 = vand.u32 4294901760, %v2737_v9 }
  0xac   : > { %957 = vmatpush.msrb.mxu0 %v2631_v42  ;;  %1104 = vmatpush.msrb.mxu2 %v2635_v54 }
  0xad   : > { %1018 = vmatpush.msrb.mxu1 %v1017_v36  ;;  %1147 = vmatpush.msrb.mxu3 %v2595_v19  ;;  %v2730_v36 = vsub.f32 %v243_v16, %v2703_v10  ;;  %v3138_v16 = vand.u32 4294901760, %v2715_v41 }
  0xae   : > { %959 = vmatpush.msrb.mxu0 %v2643_v58  ;;  %1107 = vmatpush.msrb.mxu2 %v2647_v56 }
  0xaf   : > { %1024 = vmatpush.msrb.mxu1 %v1023_v20  ;;  %1149 = vmatpush.msrb.mxu3 %v2606_v25  ;;  %v1052_v20 = vsub.f32 %v2686_v48, %v3130_v11  ;;  %v2751_v11 = vsub.f32 %v242_v46, %v2722_v24  ;;  %v3139_v33 = vand.u32 4294901760, %v2730_v36  ;;  %v1064_v46 = vsub.f32 %v2715_v41, %v3138_v16 }
  0xb0   : > { %961 = vmatpush.msrb.mxu0 %v2657_v59  ;;  %1110 = vmatpush.msrb.mxu2 %v2661_v32  ;;  %v2780_v16 = vsub.f32 %v239_v43, %v2756_v0 }
  0xb1   : > { %1030 = vmatpush.msrb.mxu1 %v1029_v52  ;;  %1151 = vmatpush.msrb.mxu3 %v2619_v30  ;;  %v2744_v52 = vand.u32 4294901760, %v240_v8  ;;  %v1053_v44 = vand.u32 4294901760, %v1052_v20  ;;  %v1059_v20 = vand.u32 4294901760, %v1058_v40  ;;  %v3144_v15 = vand.u32 4294901760, %v2751_v11 }
  0xb2   : > { %963 = vmatpush.msrb.mxu0 %v2669_v23  ;;  %1113 = vmatpush.msrb.mxu2 %v2673_v55  ;;  %v1321_v17 = vsub.f32 %v2730_v36, %v3139_v33  ;;  %v1065_v33 = vand.u32 4294901760, %v1064_v46 }
  0xb3   : > { %1036 = vmatpush.msrb.mxu1 %v1035_v1  ;;  %1153 = vmatpush.msrb.mxu3 %v2631_v42  ;;  %v238_v1 = vld [vmem:[#allocation5 + $0x1d0] sm:$0xff]  ;;  %v2769_v57 = vsub.f32 %v240_v8, %v2744_v52  ;;  %v236_v8 = vld [vmem:[#allocation5 + $0x1c0] sm:$0xff]  ;;  %v1327_v38 = vsub.f32 %v2751_v11, %v3144_v15 }
  0xb4   : > { %965 = vmatpush.msrb.mxu0 %v2690_v63  ;;  %1116 = vmatpush.msrb.mxu2 %v2686_v48  ;;  %v2773_v50 = vand.u32 4294901760, %v238_v1  ;;  %v1322_v46 = vand.u32 4294901760, %v1321_v17  ;;  %v3189_v17 = vand.u32 4294901760, %v2678_v27 }
  0xb5   : > { %1042 = vmatpush.msrb.mxu1 %v1041_v6  ;;  %1155 = vmatpush.msrb.mxu3 %v2643_v58  ;;  %v237_v6 = vld [vmem:[#allocation5 + $0x1c8] sm:$0xff]  ;;  %v3145_v43 = vand.u32 4294901760, %v2769_v57 }
  0xb6   : > { %967 = vmatpush.msrb.mxu0 %v2709_v4  ;;  %1119 = vmatpush.msrb.mxu2 %v2698_v3  ;;  %v2788_v40 = vand.u32 4294901760, %v237_v6 }
  0xb7   : > { %1048 = vmatpush.msrb.mxu1 %v1047_v35  ;;  %1157 = vmatpush.msrb.mxu3 %v2657_v59  ;;  %v1070_v35 = vsub.f32 %v2737_v9, %v3141_v5  ;;  %v3146_v5 = vand.u32 4294901760, %v2780_v16  ;;  %v1339_v49 = vsub.f32 %v2769_v57, %v3145_v43 }
  0xb8   : > { %973 = vmatmul.f32.vlgmr.msrb.gmra.mxu0 %v972_v51  ;;  %1122 = vmatpush.msrb.mxu2 %v2715_v41  ;;  %v3143_v51 = vand.u32 4294901760, %v2761_v12 }
  0xb9   : > { %1174 = vmatpush.msra.mxu0 %v979_v18  ;;  %1054 = vmatpush.msrb.mxu1 %v1053_v44  ;;  %v2799_v18 = vsub.f32 %v238_v1, %v2773_v50  ;;  %v2801_v44 = vand.u32 4294901760, %v236_v8  ;;  %v1071_v47 = vand.u32 4294901760, %v1070_v35  ;;  %v2813_v1 = vsub.f32 %v237_v6, %v2788_v40  ;;  %v231_v6 = vld [vmem:[#allocation5 + $0x198] sm:$0xff] }
  0xba   : > { %1159 = vmatpush.msrb.mxu3 %v2669_v23  ;;  %1125 = vmatpush.msrb.mxu2 %v2737_v9  ;;  %v3190_v35 = vand.u32 4294901760, %v2569_v21  ;;  %v1345_v43 = vsub.f32 %v2780_v16, %v3146_v5  ;;  %v3191_v21 = vand.u32 4294901760, %v2574_v29  ;;  %v3193_v5 = vand.u32 4294901760, %v2588_v7 }
  0xbb   : > { %1178 = vmatpush.msra.mxu0 %v985_v45  ;;  %1060 = vmatpush.msrb.mxu1 %v1059_v20  ;;  %v1333_v45 = vsub.f32 %v2761_v12, %v3143_v51  ;;  %v2815_v20 = vand.u32 4294901760, %v235_v53  ;;  %v1328_v51 = vand.u32 4294901760, %v1327_v38  ;;  %v2827_v15 = vsub.f32 %v236_v8, %v2801_v44 }
  0xbc   : > { %1161 = vmatpush.msrb.mxu3 %v2690_v63  ;;  %1128 = vmatmul.f32.vlgmr.msrb.gmra.mxu2 %v2678_v27  ;;  %v232_v27 = vld [vmem:[#allocation5 + $0x1a0] sm:$0xff]  ;;  %v3192_v29 = vand.u32 4294901760, %v2799_v18  ;;  %v3194_v7 = vand.u32 4294901760, %v2609_v2  ;;  %v3196_v2 = vand.u32 4294901760, %v2622_v28  ;;  %v3198_v28 = vand.u32 4294901760, %v2635_v54 }
  0xbd   : > { %1182 = vmatpush.msra.mxu0 %v991_v22  ;;  %1278 = vmatpush.msra.mxu2 %v2703_v10  ;;  %v233_v22 = vld [vmem:[#allocation5 + $0x1a8] sm:$0xff]  ;;  %v1334_v38 = vand.u32 4294901760, %v1333_v45  ;;  %v2839_v8 = vsub.f32 %v235_v53, %v2815_v20  ;;  %v230_v45 = vld [vmem:[#allocation5 + $0x190] sm:$0xff] }
  0xbe   : > { %1066 = vmatpush.msrb.mxu1 %v1065_v33  ;;  %1163 = vmatpush.msrb.mxu3 %v2709_v4  ;;  %v2829_v33 = vand.u32 4294901760, %v234_v37 }
  0xbf   : > { %1167 = vmatmul.f32.vlgmr.msrb.gmra.mxu3 %v3189_v17  ;;  %1186 = vmatpush.msra.mxu0 %v3190_v35  ;;  %v3147_v17 = vand.u32 4294901760, %v2813_v1  ;;  %v2841_v35 = vand.u32 4294901760, %v233_v22 }
  0xc0   : > { %1280 = vmatpush.msra.mxu2 %v2722_v24  ;;  %1323 = vmatpush.msra.mxu3 %v1322_v46  ;;  %v1340_v46 = vand.u32 4294901760, %v1339_v49  ;;  %v2851_v53 = vsub.f32 %v234_v37, %v2829_v33  ;;  %v1346_v49 = vand.u32 4294901760, %v1345_v43 }
  0xc1   : > { %1072 = vmatpush.msrb.mxu1 %v1071_v47  ;;  %1190 = vmatpush.msra.mxu0 %v3191_v21  ;;  %v1351_v47 = vsub.f32 %v2799_v18, %v3192_v29  ;;  %v2853_v21 = vand.u32 4294901760, %v232_v27  ;;  %v2864_v37 = vsub.f32 %v233_v22, %v2841_v35  ;;  %v2866_v29 = vand.u32 4294901760, %v231_v6 }
  0xc2   : > { %1074 = vmatmul.f32.vlgmr.msrb.gmra.mxu1 %v2651_v26  ;;  %1282 = vmatpush.msra.mxu2 %v2739_v62 }
  0xc3   : > { %1241 = vmatpush.msra.mxu1 %v2520_v39  ;;  %1329 = vmatpush.msra.mxu3 %v1328_v51  ;;  %v1357_v39 = vsub.f32 %v2813_v1, %v3147_v17  ;;  %v2877_v22 = vsub.f32 %v232_v27, %v2853_v21  ;;  %v229_v17 = vld [vmem:[#allocation5 + $0x188] sm:$0xff]  ;;  %v249_v51 = vld.sshfl [vmem:[#allocation1 + $0x18] sm:$0xff pattern:$0x73625140]  ;;  %v3200_v27 = vand.u32 4294901760, %v2647_v56  ;;  %v3202_v56 = vand.u32 4294901760, %v2661_v32 }
  0xc4   : > { %1194 = vmatpush.msra.mxu0 %v3193_v5  ;;  %1284 = vmatpush.msra.mxu2 %v2744_v52  ;;  %v3195_v5 = vand.u32 4294901760, %v2827_v15 }
  0xc5   : > { %1243 = vmatpush.msra.mxu1 %v2527_v13  ;;  %1335 = vmatpush.msra.mxu3 %v1334_v38  ;;  %v1352_v13 = vand.u32 4294901760, %v1351_v47  ;;  %v228_v38 = vld [vmem:[#allocation5 + $0x180] sm:$0xff] }
  0xc6   : > { %1198 = vmatpush.msra.mxu0 %v3194_v7  ;;  %1286 = vmatpush.msra.mxu2 %v2756_v0  ;;  %v1363_v43 = vsub.f32 %v2827_v15, %v3195_v5  ;;  %v2882_v7 = vand.u32 4294901760, %v230_v45  ;;  %v2890_v5 = vsub.f32 %v231_v6, %v2866_v29  ;;  %v1386_v6 = vand.u32 4294901760, %v2877_v22 }
  0xc7   : > { %1245 = vmatpush.msra.mxu1 %v2534_v61  ;;  %1341 = vmatpush.msra.mxu3 %v1340_v46  ;;  %v1358_v61 = vand.u32 4294901760, %v1357_v39  ;;  %v3197_v46 = vand.u32 4294901760, %v2839_v8  ;;  %v3199_v39 = vand.u32 4294901760, %v2851_v53 }
  0xc8   : > { %1202 = vmatpush.msra.mxu0 %v3196_v2  ;;  %1288 = vmatpush.msra.mxu2 %v2773_v50  ;;  %v2895_v2 = vand.u32 4294901760, %v229_v17  ;;  %v2908_v54 = vsub.f32 %v230_v45, %v2882_v7 }
  0xc9   : > { %1247 = vmatpush.msra.mxu1 %v2544_v31  ;;  %1347 = vmatpush.msra.mxu3 %v1346_v49  ;;  %v1369_v47 = vsub.f32 %v2839_v8, %v3197_v46  ;;  %v2897_v31 = vand.u32 4294901760, %v249_v51  ;;  %v1364_v49 = vand.u32 4294901760, %v1363_v43  ;;  %v1375_v46 = vsub.f32 %v2851_v53, %v3199_v39 }
  0xca   : > { %1206 = vmatpush.msra.mxu0 %v3198_v28  ;;  %1290 = vmatpush.msra.mxu2 %v2788_v40  ;;  %v2910_v28 = vand.u32 4294901760, %v228_v38  ;;  %v1392_v39 = vand.u32 4294901760, %v2890_v5  ;;  %v2921_v45 = vsub.f32 %v229_v17, %v2895_v2  ;;  %v1398_v32 = vand.u32 4294901760, %v2908_v54 }
  0xcb   : > { %1249 = vmatpush.msra.mxu1 %v2551_v34  ;;  %1353 = vmatpush.msra.mxu3 %v1352_v13  ;;  %v1370_v34 = vand.u32 4294901760, %v1369_v47  ;;  %v3201_v13 = vand.u32 4294901760, %v2864_v37  ;;  %v3203_v47 = vand.u32 4294901760, %v2673_v55 }
  0xcc   : > { %1210 = vmatpush.msra.mxu0 %v3200_v27  ;;  %1292 = vmatpush.msra.mxu2 %v2801_v44  ;;  %v2924_v27 = vsub.f32 %v249_v51, %v2897_v31  ;;  %v2935_v17 = vsub.f32 %v228_v38, %v2910_v28  ;;  %v1393_v51 = vsub.f32 %v2890_v5, %v1392_v39  ;;  %v1404_v55 = vand.u32 4294901760, %v2921_v45 }
  0xcd   : > { %1251 = vmatpush.msra.mxu1 %v2562_v14  ;;  %1359 = vmatpush.msra.mxu3 %v1358_v61  ;;  %v1381_v43 = vsub.f32 %v2864_v37, %v3201_v13  ;;  %v1376_v14 = vand.u32 4294901760, %v1375_v46  ;;  %v1387_v61 = vsub.f32 %v2877_v22, %v1386_v6 }
  0xce   : > { %1214 = vmatpush.msra.mxu0 %v3202_v56  ;;  %1294 = vmatpush.msra.mxu2 %v2815_v20  ;;  %v1311_v46 = vand.u32 4294901760, %v2924_v27  ;;  %v1394_v13 = vand.u32 4294901760, %v1393_v51 }
  0xcf   : > { %1253 = vmatpush.msra.mxu1 %v2582_v60  ;;  %1365 = vmatpush.msra.mxu3 %v1364_v49  ;;  %v1382_v60 = vand.u32 4294901760, %v1381_v43  ;;  %v3204_v49 = vand.u32 4294901760, %v2686_v48  ;;  %v1388_v38 = vand.u32 4294901760, %v1387_v61  ;;  %v1399_v48 = vsub.f32 %v2908_v54, %v1398_v32 }
  0xd0   : > { %1218 = vmatpush.msra.mxu0 %v3203_v47  ;;  %1296 = vmatpush.msra.mxu2 %v2829_v33  ;;  %v3206_v43 = vand.u32 4294901760, %v2715_v41 }
  0xd1   : > { %1255 = vmatpush.msra.mxu1 %v2595_v19  ;;  %1371 = vmatpush.msra.mxu3 %v1370_v34  ;;  %v3205_v19 = vand.u32 4294901760, %v2698_v3  ;;  %v1410_v34 = vand.u32 4294901760, %v2935_v17  ;;  %v1312_v3 = vsub.f32 %v2924_v27, %v1311_v46  ;;  %v1400_v41 = vand.u32 4294901760, %v1399_v48 }
  0xd2   : > { %1222 = vmatpush.msra.mxu0 %v3204_v49  ;;  %1298 = vmatpush.msra.mxu2 %v2841_v35 }
  0xd3   : > { %1257 = vmatpush.msra.mxu1 %v2606_v25  ;;  %1377 = vmatpush.msra.mxu3 %v1376_v14  ;;  %v1405_v25 = vsub.f32 %v2921_v45, %v1404_v55  ;;  %v1411_v56 = vsub.f32 %v2935_v17, %v1410_v34 }
  0xd4   : > { %1226 = vmatpush.msra.mxu0 %v3205_v19  ;;  %1300 = vmatpush.msra.mxu2 %v2853_v21 }
  0xd5   : > { %1259 = vmatpush.msra.mxu1 %v2619_v30  ;;  %1383 = vmatpush.msra.mxu3 %v1382_v60  ;;  %v3207_v30 = vand.u32 4294901760, %v2737_v9  ;;  %v1406_v14 = vand.u32 4294901760, %v1405_v25  ;;  %v1412_v9 = vand.u32 4294901760, %v1411_v56 }
  0xd6   : > { %1230 = vmatpush.msra.mxu0 %v3206_v43  ;;  %1302 = vmatpush.msra.mxu2 %v2866_v29 }
  0xd7   : > { %1261 = vmatpush.msra.mxu1 %v2631_v42  ;;  %1389 = vmatpush.msra.mxu3 %v1388_v38  ;;  %v1313_v42 = vand.u32 4294901760, %v1312_v3 }
  0xd8   : > { %1234 = vmatpush.msra.mxu0 %v3207_v30  ;;  %1304 = vmatpush.msra.mxu2 %v2882_v7 }
  0xd9   : > { %1263 = vmatpush.msra.mxu1 %v2643_v58  ;;  %1395 = vmatpush.msra.mxu3 %v1394_v13  ;;  %v3208_v58 = vand.u32 4294901760, %v2730_v36 }
  0xda   : > { %1236 = vmatmul.f32.vlgmr.msra.gmra.mxu0 %v2651_v26  ;;  %1306 = vmatpush.msra.mxu2 %v2895_v2 }
  0xdb   : > { %1421 = vmatpush.msrb.mxu0 %v2730_v36  ;;  %1265 = vmatpush.msra.mxu1 %v2657_v59  ;;  %v3209_v59 = vand.u32 4294901760, %v2751_v11 }
  0xdc   : > { %1401 = vmatpush.msra.mxu3 %v1400_v41  ;;  %1308 = vmatpush.msra.mxu2 %v2910_v28 }
  0xdd   : > { %1424 = vmatpush.msrb.mxu0 %v2751_v11  ;;  %1267 = vmatpush.msra.mxu1 %v2669_v23  ;;  %v3210_v23 = vand.u32 4294901760, %v2761_v12  ;;  %v3216_v11 = vand.u32 4294901760, %v2839_v8 }
  0xde   : > { %1407 = vmatpush.msra.mxu3 %v1406_v14  ;;  %1314 = vmatmul.f32.vlgmr.msra.gmra.mxu2 %v1313_v42 }
  0xdf   : > { %1427 = vmatpush.msrb.mxu0 %v2761_v12  ;;  %1515 = vmatpush.msrb.mxu2 %v3208_v58 }
  0xe0   : > { %1269 = vmatpush.msra.mxu1 %v2690_v63  ;;  %1413 = vmatpush.msra.mxu3 %v1412_v9  ;;  %v3211_v63 = vand.u32 4294901760, %v2769_v57 }
  0xe1   : > { %1415 = vmatmul.f32.vlgmr.msra.gmra.mxu3 %v2897_v31  ;;  %1430 = vmatpush.msrb.mxu0 %v2769_v57 }
  0xe2   : > { %1519 = vmatpush.msrb.mxu2 %v3209_v59  ;;  %1582 = vmatpush.msrb.mxu3 %v2703_v10 }
  0xe3   : > { %1271 = vmatpush.msra.mxu1 %v2709_v4  ;;  %1433 = vmatpush.msrb.mxu0 %v2780_v16  ;;  %v3214_v4 = vand.u32 4294901760, %v2813_v1 }
  0xe4   : > { %1273 = vmatmul.f32.vlgmr.msra.gmra.mxu1 %v2651_v26  ;;  %1523 = vmatpush.msrb.mxu2 %v3210_v23  ;;  %v3212_v26 = vand.u32 4294901760, %v2780_v16 }
  0xe5   : > { %1474 = vmatpush.msrb.mxu1 %v2703_v10  ;;  %1584 = vmatpush.msrb.mxu3 %v2722_v24  ;;  %v3213_v10 = vand.u32 4294901760, %v2799_v18 }
  0xe6   : > { %1436 = vmatpush.msrb.mxu0 %v2799_v18  ;;  %1527 = vmatpush.msrb.mxu2 %v3211_v63 }
  0xe7   : > { %1476 = vmatpush.msrb.mxu1 %v2722_v24  ;;  %1586 = vmatpush.msrb.mxu3 %v2739_v62 }
  0xe8   : > { %1439 = vmatpush.msrb.mxu0 %v2813_v1  ;;  %1531 = vmatpush.msrb.mxu2 %v3212_v26 }
  0xe9   : > { %1478 = vmatpush.msrb.mxu1 %v2739_v62  ;;  %1588 = vmatpush.msrb.mxu3 %v2744_v52  ;;  %v3215_v62 = vand.u32 4294901760, %v2827_v15 }
  0xea   : > { %1442 = vmatpush.msrb.mxu0 %v2827_v15  ;;  %1535 = vmatpush.msrb.mxu2 %v3213_v10  ;;  %v3218_v15 = vand.u32 4294901760, %v2864_v37 }
  0xeb   : > { %1480 = vmatpush.msrb.mxu1 %v2744_v52  ;;  %1590 = vmatpush.msrb.mxu3 %v2756_v0 }
  0xec   : > { %1445 = vmatpush.msrb.mxu0 %v2839_v8  ;;  %1539 = vmatpush.msrb.mxu2 %v3214_v4  ;;  %v292_v24 = vpop.f32.mrf.mxu0 }
  0xed   : > { %1482 = vmatpush.msrb.mxu1 %v2756_v0  ;;  %1592 = vmatpush.msrb.mxu3 %v2773_v50  ;;  %v3217_v0 = vand.u32 4294901760, %v2851_v53 }
  0xee   : > { %1448 = vmatpush.msrb.mxu0 %v2851_v53  ;;  %1543 = vmatpush.msrb.mxu2 %v3215_v62 }
  0xef   : > { %1484 = vmatpush.msrb.mxu1 %v2773_v50  ;;  %1594 = vmatpush.msrb.mxu3 %v2788_v40 }
  0xf0   : > { %1451 = vmatpush.msrb.mxu0 %v2864_v37  ;;  %1547 = vmatpush.msrb.mxu2 %v3216_v11 }
  0xf1   : > { %1486 = vmatpush.msrb.mxu1 %v2788_v40  ;;  %1596 = vmatpush.msrb.mxu3 %v2801_v44 }
  0xf2   : > { %1454 = vmatpush.msrb.mxu0 %v2877_v22  ;;  %1551 = vmatpush.msrb.mxu2 %v3217_v0 }
  0xf3   : > { %1488 = vmatpush.msrb.mxu1 %v2801_v44  ;;  %1598 = vmatpush.msrb.mxu3 %v2815_v20 }
  0xf4   : > { %1457 = vmatpush.msrb.mxu0 %v2890_v5  ;;  %1555 = vmatpush.msrb.mxu2 %v3218_v15 }
  0xf5   : > { %1490 = vmatpush.msrb.mxu1 %v2815_v20  ;;  %1600 = vmatpush.msrb.mxu3 %v2829_v33 }
  0xf6   : > { %1460 = vmatpush.msrb.mxu0 %v2908_v54  ;;  %1559 = vmatpush.msrb.mxu2 %v1386_v6  ;;  %v393_v12 = vpop.f32.mrf.mxu1 }
  0xf7   : > { %1492 = vmatpush.msrb.mxu1 %v2829_v33  ;;  %1602 = vmatpush.msrb.mxu3 %v2841_v35  ;;  %v394_v36 = vadd.f32 %v393_v12, %v292_v24 }
  0xf8   : > { %1463 = vmatpush.msrb.mxu0 %v2921_v45  ;;  %1563 = vmatpush.msrb.mxu2 %v1392_v39  ;;  %v447_v16 = vpop.f32.mrf.mxu2  ;;  %v486_v57 = vpop.f32.mrf.mxu3 }
  0xf9   : > { %1494 = vmatpush.msrb.mxu1 %v2841_v35  ;;  %1604 = vmatpush.msrb.mxu3 %v2853_v21  ;;  %v448_v52 = vadd.f32 %v447_v16, %v394_v36 }
  0xfa   : > { %1466 = vmatpush.msrb.mxu0 %v2935_v17  ;;  %1567 = vmatpush.msrb.mxu2 %v1398_v32 }
  0xfb   : > { %1496 = vmatpush.msrb.mxu1 %v2853_v21  ;;  %1606 = vmatpush.msrb.mxu3 %v2866_v29  ;;  %v487_v50 = vadd.f32 %v486_v57, %v448_v52 }
  0xfc   : > { %1469 = vmatmul.f32.vlgmr.msrb.gmra.mxu0 %v2924_v27  ;;  %1571 = vmatpush.msrb.mxu2 %v1404_v55 }
  0xfd   : > { %1498 = vmatpush.msrb.mxu1 %v2866_v29  ;;  %1608 = vmatpush.msrb.mxu3 %v2882_v7  ;;  %v555_v40 = vpop.f32.mrf.mxu0 }
  0xfe   : > { %1575 = vmatpush.msrb.mxu2 %v1410_v34  ;;  %v556_v18 = vadd.f32 %v555_v40, %v487_v50 }
  0xff   : > { %1500 = vmatpush.msrb.mxu1 %v2882_v7  ;;  %1610 = vmatpush.msrb.mxu3 %v2895_v2 }
 0x100   : > { %1577 = vmatmul.f32.vlgmr.msrb.gmra.mxu2 %v2897_v31  ;;  %v592_v44 = vpop.f32.mrf.mxu1 }
 0x101   : > { %1502 = vmatpush.msrb.mxu1 %v2895_v2  ;;  %1612 = vmatpush.msrb.mxu3 %v2910_v28  ;;  %v593_v1 = vadd.f32 %v592_v44, %v556_v18  ;;  %v633_v20 = vpop.f32.mrf.mxu2 }
 0x102   : > { %1614 = vmatmul.f32.vlgmr.msrb.gmra.mxu3 %v2897_v31 }
 0x103   : > { %1504 = vmatpush.msrb.mxu1 %v2910_v28  ;;  %v634_v33 = vadd.f32 %v633_v20, %v593_v1  ;;  %v1928_v28 = vmov 0.0  }
 0x104   : > { %1508 = vmatmul.f32.vlgmr.msrb.gmra.mxu1 %v1311_v46  ;;  %v734_v8 = vpop.f32.mrf.mxu3  ;;  %1618 = vst [vmem:[%s3067_s27] sm:$0x1] %v1928_v28 }
 0x105   : > { %v735_v53 = vadd.f32 %v734_v8, %v634_v33  ;;  %1619 = vst [vmem:[%s3067_s27 + $0x3] sm:$0x1] %v1928_v28 }
 0x113   : > { %v788_v35 = vpop.f32.mrf.mxu0 }
 0x114   : > { %v789_v37 = vadd.f32 %v788_v35, %v735_v53 }
 0x11d   : > { %v827_v21 = vpop.f32.mrf.mxu1  ;;  %v896_v22 = vpop.f32.mrf.mxu2 }
 0x11e   : > { %v828_v29 = vadd.f32 %v827_v21, %v789_v37 }
 0x120   : > { %v897_v7 = vadd.f32 %v896_v22, %v828_v29  ;;  %v933_v5 = vpop.f32.mrf.mxu3 }
 0x122   : > { %v934_v31 = vadd.f32 %v933_v5, %v897_v7 }
 0x135   : > { %v974_v2 = vpop.f32.mrf.mxu0 }
 0x136   : > { %v975_v54 = vadd.f32 %v974_v2, %v934_v31 }
 0x13f   : > { %v1075_v6 = vpop.f32.mrf.mxu1  ;;  %v1129_v45 = vpop.f32.mrf.mxu2 }
 0x140   : > { %v1076_v39 = vadd.f32 %v1075_v6, %v975_v54 }
 0x142   : > { %v1130_v27 = vadd.f32 %v1129_v45, %v1076_v39  ;;  %v1168_v61 = vpop.f32.mrf.mxu3 }
 0x144   : > { %v1169_v32 = vadd.f32 %v1168_v61, %v1130_v27 }
 0x157   : > { %v1237_v47 = vpop.f32.mrf.mxu0 }
 0x158   : > { %v1238_v60 = vadd.f32 %v1237_v47, %v1169_v32 }
 0x161   : > { %v1274_v17 = vpop.f32.mrf.mxu1  ;;  %v1315_v49 = vpop.f32.mrf.mxu2 }
 0x162   : > { %v1275_v51 = vadd.f32 %v1274_v17, %v1238_v60 }
 0x164   : > { %v1316_v55 = vadd.f32 %v1315_v49, %v1275_v51  ;;  %v1416_v46 = vpop.f32.mrf.mxu3 }
 0x166   : > { %v1417_v19 = vadd.f32 %v1416_v46, %v1316_v55 }
 0x179   : > { %v1470_v38 = vpop.f32.mrf.mxu0 }
 0x17a   : > { %v1471_v48 = vadd.f32 %v1470_v38, %v1417_v19 }
 0x181   : > { %v1509_v34 = vpop.f32.mrf.mxu1 }
 0x182   : > { %v1510_v13 = vadd.f32 %v1509_v34, %v1471_v48 }
 0x183   : > { %v1578_v43 = vpop.f32.mrf.mxu2 }
 0x184   : > { %v1579_v25 = vadd.f32 %v1578_v43, %v1510_v13 }
 0x185   : > { %v1615_v3 = vpop.f32.mrf.mxu3 }
 0x186   : > { %v1616_v30 = vadd.f32 %v1615_v3, %v1579_v25 }
 0x188   : > { %1620 = vst [vmem:[%s3067_s27 + $0x1] sm:$0x3] %v1616_v30 }
 0x189   : > { %1880 = shalt.err (!%p1877_p9)
}
 0x18a   : > { %1739 = dma.vmem_to_hbm [thread:$0]  (%p2004_p13), %s1635_s15, 64, %s1637_s18, %s1622_s19  }
 0x18b PF: > { %s1648_s29 = sand.u32 1, %s1911_s9   ;;  %p3219_p10 = scmp.ge.s32.totalorder %s1923_s12, 2 }
 0x18c   : > { %s1649_s4 = scalar_lea.sflag [#allocation4], %s1648_s29 }
 0x18d   : > { %p1750_p11 = pnand %p3219_p10, %p2009_p4 }
 0x18f   : > { %p1751_p0 = pneg %p1750_p11 }
 0x191   : > { %1906 = dma.done.wait (%p1751_p0), %s1649_s4, 64  }
 0x192   : > { %1908 = vsyncadd (%p1751_p0), %s1649_s4, 4294967232  ;;  %p16_p2 = scmp.ge.s32.totalorder %s1984_s23, 4   ;;  %s3220_s9 = smov %s1915_s10 }
 0x193   : > { %s3221_s10 = smov %s1919_s11  ;;  %s3222_s11 = smov %s1996_s26 }
 0x194   : > { %s3223_s12 = smov %s1984_s23  ;;  %18 = sbr.rel (!%p16_p2) target bundleno = 6 (0x6), region = 77 }
 0x199   :  { %1655 = vsyncpa [#allocation3], 1 }
 0x19a   :  { %1657 = vsyncpa [#allocation3 + $0x1], 1 }
 0x19b   :  { %1658 = vsyncpa [#allocation6], 1 }
 0x19c   :  { %1659 = vsyncpa [#allocation4], 1 }
 0x19d   :  { %1661 = vsyncpa [#allocation4 + $0x1], 1 }

</bundles_post_ra>
